<compile_context>
chip_gen: v7x
topology: tpu7x:2x2x1
jax: 0.10.0
libtpu: 0.0.40
codegen_flags: <defaults>
</compile_context>

<pallas_src>
import functools
import math

import jax
import jax.numpy as jnp
from jax import lax
from jax.experimental import pallas as pl
from jax.experimental.pallas import tpu as pltpu


def _mix32(x):
    """splitmix32-style 32-bit finalizer: pure VPU integer ops (no TPU PRNG state)."""
    x = x ^ (x >> 16)
    x = x * jnp.uint32(0x7FEB352D)
    x = x ^ (x >> 15)
    x = x * jnp.uint32(0x846CA68B)
    x = x ^ (x >> 16)
    return x


def _pe_dropout_kernel(seed_ref, x_ref, pe_ref, o_ref, *, p, mode):
    """One grid step: a (TS, D) sequence tile of one batch element.

    mode: "none" (eval or p==0), "mask" (0 < p < 1), "zero" (p >= 1).
    """
    y = x_ref[...] + pe_ref[...]  # compute in x's dtype (bf16 stays bf16)

    if mode == "zero":
        o_ref[...] = jnp.zeros_like(y)
        return

    if mode == "mask":
        b = pl.program_id(0)
        st = pl.program_id(1)
        # Unique stream per (batch, seq-tile) so masks never repeat across tiles.
        tile_id = (b * pl.num_programs(1) + st).astype(jnp.uint32)
        base = seed_ref[0].astype(jnp.uint32) + tile_id * jnp.uint32(0x9E3779B9)

        ts, d = y.shape
        rows = lax.broadcasted_iota(jnp.int32, (ts, d), 0)
        cols = lax.broadcasted_iota(jnp.int32, (ts, d), 1)
        ctr = (rows * d + cols).astype(jnp.uint32)

        bits = _mix32(_mix32(base) ^ (ctr * jnp.uint32(0x85EBCA6B)))
        # Integer threshold compare: P(drop) = threshold / 2^32 = p.
        threshold = jnp.uint32(min(int(p * 4294967296.0), 4294967295))
        keep = bits >= threshold
        scale = jnp.asarray(1.0 / (1.0 - p), dtype=y.dtype)
        y = jnp.where(keep, y * scale, jnp.zeros_like(y))

    o_ref[...] = y


def make_positional_encoding(max_len, d_model, dtype=jnp.float32):
    """Deterministic PE buffer, identical math to the PyTorch __init__."""
    position = jnp.arange(0.0, max_len, dtype=jnp.float32)[:, None]          # (max_len, 1)
    div_term = jnp.exp(
        jnp.arange(0.0, d_model, 2, dtype=jnp.float32) * -(math.log(10000.0) / d_model)
    )                                                                          # (d_model/2,)
    ang = position * div_term                                                  # (max_len, d_model/2)
    pe = jnp.zeros((max_len, d_model), dtype=jnp.float32)
    pe = pe.at[:, 0::2].set(jnp.sin(ang))
    pe = pe.at[:, 1::2].set(jnp.cos(ang))
    return pe.astype(dtype)


def _pick_seq_tile(S, D, itemsize, budget_bytes=2 * 1024 * 1024):
    """Largest multiple-of-8 tile that divides S with one tile <= ~budget bytes.

    ~2 MiB per tile keeps (2x x + 2x out + 2x pe) double-buffered tiles well
    under v5e's 16 MiB scoped-VMEM default and far under v7x's 64 MiB VMEM.
    Falls back to TS = S (full extent, always legal) when S has no suitable divisor.
    """
    cap = max(8, (budget_bytes // max(1, D * itemsize)) // 8 * 8)
    best = None
    for cand in range(8, min(S, cap) + 1, 8):
        if S % cand == 0:
            best = cand
    return best if best is not None else S


def positional_encoding_forward(x, pe, *, p=0.2, training=True, seed=0):
    """Pallas forward: y = dropout(x + pe[:S], p) with inverted-dropout scaling."""
    B, S, D = x.shape
    pe_s = pe[:S].astype(x.dtype)                        # stream pe in x's dtype (glue)
    ts = _pick_seq_tile(S, D, jnp.dtype(x.dtype).itemsize)
    n_st = S // ts

    if training and p >= 1.0:
        mode = "zero"
    elif training and p > 0.0:
        mode = "mask"
    else:
        mode = "none"

    kernel = functools.partial(_pe_dropout_kernel, p=float(p), mode=mode)
    seed_arr = jnp.array([seed], dtype=jnp.int32)

    return pl.pallas_call(
        kernel,
        out_shape=jax.ShapeDtypeStruct((B, S, D), x.dtype),
        grid_spec=pltpu.PrefetchScalarGridSpec(
            num_scalar_prefetch=1,                       # seed lives in SMEM
            grid=(B, n_st),
            in_specs=[
                # batch dim squeezed -> kernel sees clean (TS, D) tiles
                pl.BlockSpec((None, ts, D), lambda b, st, seed: (b, st, 0)),  # x tile
                pl.BlockSpec((ts, D), lambda b, st, seed: (st, 0)),           # pe tile
            ],
            out_specs=pl.BlockSpec((None, ts, D), lambda b, st, seed: (b, st, 0)),
        ),
        compiler_params=pltpu.CompilerParams(
            dimension_semantics=("parallel", "parallel"),  # megacore-sharded on v7x
        ),
    )(seed_arr, x, pe_s)


if __name__ == "__main__":
    # Small shapes consistent with the module's (batch, seq, d_model) convention.
    # d_model = 128 keeps the output lane-dense (last dim a multiple of 128).
    B, S, D = 2, 16, 128
    MAX_LEN = 64
    P_DROP = 0.2

    key = jax.random.PRNGKey(0)
    x = jax.random.normal(key, (B, S, D), dtype=jnp.float32)

    pe = make_positional_encoding(MAX_LEN, D)
    ref = x + pe[None, :S, :]

    # Eval-mode (dropout disabled) — exact semantics of the PE add.
    y_eval = positional_encoding_forward(x, pe, p=P_DROP, training=False)
    jax.block_until_ready(y_eval)
    assert jnp.allclose(y_eval, ref, atol=1e-6), "PE add mismatch"

    # Training-mode (dropout active, deterministic seed).
    y_train = positional_encoding_forward(x, pe, p=P_DROP, training=True, seed=1234)
    jax.block_until_ready(y_train)
    assert y_train.shape == (B, S, D)

    # Surviving elements are scaled copies of (x + pe); zeros are dropped positions.
    kept = y_train != 0.0
    assert jnp.allclose(
        jnp.where(kept, y_train, 0.0),
        jnp.where(kept, ref / (1.0 - P_DROP), 0.0),
        atol=1e-5,
    ), "dropout scaling mismatch"
    drop_frac = 1.0 - float(jnp.mean(kept.astype(jnp.float32)))
    assert 0.05 < drop_frac < 0.5, "dropout rate far from p"

    print("KERNEL_OK")
</pallas_src>

<mosaic_0001>
module attributes {stable_mosaic.version = 11 : i64} {
  func.func @_pe_dropout_kernel(%arg0: i32, %arg1: i32, %arg2: memref<1xi32, #tpu.memory_space<smem>>, %arg3: memref<1x16x128xf32, #tpu.memory_space<vmem>>, %arg4: memref<16x128xf32, #tpu.memory_space<vmem>>, %arg5: memref<1x16x128xf32, #tpu.memory_space<vmem>>) attributes {dimension_semantics = [#tpu.dimension_semantics<parallel>, #tpu.dimension_semantics<parallel>], iteration_bounds = array<i64: 2, 1>, scalar_prefetch = 1 : i64, scratch_operands = 0 : i64, tpu.core_type = #tpu.core_type<tc>, window_params = [{transform_indices = @transform_0, window_bounds = array<i64: 1, 16, 128>}, {transform_indices = @transform_1, window_bounds = array<i64: 16, 128>}, {transform_indices = @transform_2, window_bounds = array<i64: 1, 16, 128>}]} {
    %c0 = arith.constant 0 : index
    %c0_0 = arith.constant 0 : index
    %c0_1 = arith.constant 0 : index
    %0 = vector.load %arg3[%c0, %c0_0, %c0_1] : memref<1x16x128xf32, #tpu.memory_space<vmem>>, vector<1x16x128xf32>
    %1 = vector.shape_cast %0 : vector<1x16x128xf32> to vector<16x128xf32>
    %c0_2 = arith.constant 0 : index
    %c0_3 = arith.constant 0 : index
    %2 = vector.load %arg4[%c0_2, %c0_3] : memref<16x128xf32, #tpu.memory_space<vmem>>, vector<16x128xf32>
    %3 = arith.addf %1, %2 : vector<16x128xf32>
    %c0_4 = arith.constant 0 : index
    %c0_5 = arith.constant 0 : index
    %c0_6 = arith.constant 0 : index
    %4 = vector.load %arg5[%c0_4, %c0_5, %c0_6] : memref<1x16x128xf32, #tpu.memory_space<vmem>>, vector<1x16x128xf32>
    %5 = vector.shape_cast %4 : vector<1x16x128xf32> to vector<16x128xf32>
    %6 = vector.shape_cast %3 : vector<16x128xf32> to vector<1x16x128xf32>
    tpu.vector_store %arg5[%c0_4, %c0_5, %c0_6], %6 {strides = array<i32>} : memref<1x16x128xf32, #tpu.memory_space<vmem>>, vector<1x16x128xf32>,
    return
  }
  func.func @transform_0(%arg0: i32, %arg1: i32, %arg2: memref<1xi32, #tpu.memory_space<smem>>) -> (i32, i32, i32) {
    %c0_i32 = arith.constant 0 : i32
    %c0_i32_0 = arith.constant 0 : i32
    return %arg0, %arg1, %c0_i32 : i32, i32, i32
  }
  func.func @transform_1(%arg0: i32, %arg1: i32, %arg2: memref<1xi32, #tpu.memory_space<smem>>) -> (i32, i32) {
    %c0_i32 = arith.constant 0 : i32
    %c0_i32_0 = arith.constant 0 : i32
    return %arg1, %c0_i32 : i32, i32
  }
  func.func @transform_2(%arg0: i32, %arg1: i32, %arg2: memref<1xi32, #tpu.memory_space<smem>>) -> (i32, i32, i32) {
    %c0_i32 = arith.constant 0 : i32
    %c0_i32_0 = arith.constant 0 : i32
    return %arg0, %arg1, %c0_i32 : i32, i32, i32
  }
}

</mosaic_0001>

<bundles_post_ra>
// kernel: tpu_custom_call.1
= control target key start
LH: loop header
LB: loop body
LE: loop exit
PB: predicated region body
PF: predicated region fallthrough
CT: control target
= control target key end

     0   :  { %9 = vsyncpa [#allocation5], 0  ;;  %s825_s0 = inlined_call_operand.<no memory space> [shape: s32[1], index: 0, kind: input, shape index: {}]   ;;  %s826_s1 = inlined_call_operand.hbm [shape: f32[2,16,128], index: 1, kind: input, shape index: {}]   ;;  %s827_s2 = inlined_call_operand.hbm [shape: f32[16,128], index: 2, kind: input, shape index: {}]   ;;  %s828_s3 = inlined_call_operand.hbm [shape: f32[2,16,128], index: 3, kind: output, shape index: {}]  }
   0x1   :  { %11 = vsyncpa [#allocation5 + $0x1], 0 }
   0x2   :  { %12 = vsyncpa [#allocation8], 0 }
   0x3   :  { %13 = vsyncpa [#allocation6], 0 }
   0x4   :  { %15 = vsyncpa [#allocation6 + $0x1], 0  ;;  %s600_s12 = smov 0   ;;  %s602_s13 = smov 0  }
   0x5   :  { %s604_s14 = smov 0   ;;  %s606_s0 = smov 0  }
   0x6   :  { %s608_s15 = smov 0   ;;  %s610_s16 = smov 0  }
   0x7 LB: > { %s331_s17 = sadd.s32 4294967295, %s571_s16   ;;  %s332_s18 = sadd.s32 4294967294, %s571_s16   ;;  %s571_s16 = sphi %s610_s16, %s21_s16   ;;  %s567_s15 = sphi %s608_s15, %s852_s15   ;;  %s563_s0 = sphi %s606_s0, %s851_s0   ;;  %s559_s14 = sphi %s604_s14, %s850_s14   ;;  %s555_s13 = sphi %s602_s13, %s849_s13   ;;  %s551_s12 = sphi %s600_s12, %s848_s12  }
   0x8   : > { %p55_p0 = scmp.ne.s32.totalorder %s555_s13, %s551_s12  ;;  %p634_p1 = scmp.eq.s32.totalorder %s331_s17, 0 }
   0x9   : > { %p638_p2 = scmp.eq.s32.totalorder %s331_s17, 1  ;;  %p113_p3 = scmp.eq.s32.totalorder %s332_s18, 1 }
   0xa   : > { %s833_s19 = scalar_select %p634_p1, 1, 0 }
   0xb   : > { %s834_s20 = scalar_select %p638_p2, 1, 0 }
   0xc   : > { %p644_p4 = por %p634_p1, %p55_p0  ;;  %p333_p5 = scmp.ge.s32.totalorder %s571_s16, 1 }
   0xd   : > { %p649_p6 = por %p113_p3, %p55_p0  ;;  %p120_p7 = scmp.lt.s32.totalorder %s571_s16, 3 }
   0xe   : > { %s835_s21 = scalar_select %p644_p4, 1, 0 }
   0xf   : > { %s836_s22 = scalar_select %p649_p6, 1, 0 }
  0x10   : > { %p654_p8 = pnand %p333_p5, %p120_p7  ;;  %s573_s24 = smov [#allocation7]  }
  0x11   : > { %s135_s25 = sshll.u32 %s573_s24, 4  ;;  %s33_s27 = sadd.s32 1, %s567_s15  ;;  %s136_s25 = int_to_ptr.vmem [resolvable:$true] %s135_s25 }
  0x12   : > { %s837_s23 = scalar_select %p654_p8, 1, 0 }
  0x13   : > { %p358_p9 = pneg %p654_p8  ;;  %s427_s30 = scalar_lea.hbm %s827_s2, 256 }
  0x14   : > { %p428_p12 = scmp.ne.s32.totalorder %s827_s2, %s427_s30  ;;  %p434_p5 = scmp.lt.u32.totalorder %s427_s30, %s827_s2 }
  0x15   : > { %p663_p11 = pnand %p358_p9, %p634_p1 }
  0x17   : > { %p429_p13 = pneg %p663_p11 }
  0x19   : > { %p430_p0 = pnand %p429_p13, %p428_p12 }
  0x1b   : > { %p431_p3 = pneg %p430_p0 }
  0x1d   : > { %p436_p7 = pnand %p434_p5, %p431_p3 }
  0x1f   : > { %439 = shalt.err (!%p436_p7)
}
  0x20   : > { %s440_s8 = scalar_lea.vmem %s136_s25, 256  ;;  %p448_p1 = scmp.lt.s32.totalorder %s136_s25, %s136_s25 }
  0x21   : > { %p441_p9 = scmp.ne.s32.totalorder %s136_s25, %s440_s8  ;;  %p449_p4 = scmp.lt.s32.totalorder %s440_s8, %s440_s8 }
  0x23   : > { %p443_p10 = pnand %p441_p9, %p429_p13  ;;  %p450_p8 = por %p449_p4, %p448_p1 }
  0x25   : > { %p444_p6 = pneg %p443_p10 }
  0x27   : > { %p451_p2 = pnand %p450_p8, %p444_p6 }
  0x29   : > { %454 = shalt.err (!%p451_p2)
}
  0x2a   : > { %s574_s9 = smov 128   ;;  %s575_s10 = smov 8  }
  0x2b   : > { %361 = dma.hbm_to_vmem [thread:$0]  (!%p663_p11), %s827_s2, 256, %s136_s25, [#allocation8], %s574_s9, %s574_s9, %s575_s10  }
  0x2c   : > { %p35_p1 = scmp.ge.s32.totalorder %s33_s27, 2  ;;  %s42_s18 = sadd.s32 1, %s559_s14 }
  0x2d   : > { %p49_p2 = scmp.ne.s32.totalorder %s559_s14, %s555_s13  ;;  %p50_p4 = scmp.eq.s32.totalorder %s571_s16, 0 }
  0x2e   : > { %s854_s27 = smov (%p35_p1, %s33_s27), 0  ;;  %p840_p8 = scmp.ne.s32.totalorder %s834_s20, 0 }
  0x2f   : > { %p693_p6 = por %p50_p4, %p49_p2  ;;  %s37_s28 = ssub.s32 %s567_s15, %s854_s27 }
  0x30   : > { %p699_p10 = por %p840_p8, %p49_p2  ;;  %p371_p12 = scmp.lt.s32.totalorder %s571_s16, 2 }
  0x31   : > { %p40_p11 = scmp.eq.s32.totalorder %s37_s28, 0  ;;  %s149_s25 = sand.u32 1, %s559_s14  }
  0x32   : > { %s336_s29 = sshll.u32 %s149_s25, 4  ;;  %s348_s4 = sshll.u32 %s567_s15, 8 }
  0x33   : > { %s708_s30 = scalar_select %p40_p11, %s559_s14, %s42_s18  }
  0x34   : > { %s714_s7 = scalar_lea.hbm %s826_s1, %s348_s4  ;;  %s153_s20 = scalar_lea.vmem [#allocation4], %s336_s29 }
  0x35   : > { %s162_s8 = sshll.u32 %s153_s20, 4  ;;  %p720_p13 = pnand %p371_p12, %p693_p6  ;;  %s716_s8 = int_to_ptr.vmem [resolvable:$true] %s162_s8 }
  0x36   : > { %s724_s17 = scalar_lea.sflag [#allocation5], %s149_s25  ;;  %s455_s18 = scalar_lea.hbm %s714_s7, 256 }
  0x37   : > { %p456_p0 = scmp.ne.s32.totalorder %s714_s7, %s455_s18  ;;  %p457_p3 = pneg %p720_p13 }
  0x38   : > { %s460_s24 = scalar_lea.hbm %s826_s1, 512  ;;  %p461_p9 = scmp.lt.u32.totalorder %s714_s7, %s826_s1 }
  0x39   : > { %p458_p5 = pnand %p457_p3, %p456_p0  ;;  %p462_p1 = scmp.lt.u32.totalorder %s460_s24, %s455_s18 }
  0x3a   : > { %p464_p4 = scmp.lt.u32.totalorder %s455_s18, %s714_s7 }
  0x3b   : > { %p459_p7 = pneg %p458_p5  ;;  %p463_p2 = por %p462_p1, %p461_p9 }
  0x3d   : > { %p465_p6 = por %p464_p4, %p463_p2 }
  0x3f   : > { %p466_p8 = pnand %p465_p6, %p459_p7 }
  0x41   : > { %469 = shalt.err (!%p466_p8)
}
  0x42   : > { %s470_s25 = scalar_lea.vmem %s716_s8, 256  ;;  %s576_s6 = smov [#allocation4]  }
  0x43   : > { %p471_p12 = scmp.ne.s32.totalorder %s716_s8, %s470_s25  ;;  %s475_s20 = sshll.u32 %s576_s6, 4  ;;  %s476_s20 = int_to_ptr.vmem [resolvable:$false] %s475_s20 }
  0x44   : > { %s477_s28 = scalar_lea.vmem %s476_s20, 512  ;;  %p478_p5 = scmp.lt.s32.totalorder %s716_s8, %s476_s20 }
  0x45   : > { %p473_p11 = pnand %p471_p12, %p457_p3  ;;  %p479_p9 = scmp.lt.s32.totalorder %s477_s28, %s470_s25 }
  0x47   : > { %p474_p0 = pneg %p473_p11  ;;  %p480_p1 = por %p479_p9, %p478_p5 }
  0x49   : > { %p481_p2 = pnand %p480_p1, %p474_p0 }
  0x4b   : > { %484 = shalt.err (!%p481_p2)
}
  0x4c   : > { %365 = dma.hbm_to_vmem [thread:$0]  (!%p720_p13), %s714_s7, 256, %s716_s8, %s724_s17, %s574_s9, %s574_s9, %s575_s10  }
  0x4d   : > { %p843_p3 = scmp.ne.s32.totalorder %s837_s23, 0 }
  0x4e   : > { %s758_s18 = sand.u32 (!%p843_p3), 1, %s555_s13   ;;  %p844_p7 = scmp.ne.s32.totalorder (!%p843_p3), %s835_s21, 0 }
  0x4f   : > { %174 = sbr.rel (%p843_p3) target bundleno = 116 (0x74), region = 28  ;;  %s340_s29 = sshll.u32 (!%p843_p3), %s758_s18, 4 }
  0x50   : > { %s177_s24 = scalar_lea.sflag (!%p843_p3), [#allocation5], %s758_s18  ;;  %s180_s4 = scalar_lea.vmem (!%p843_p3), [#allocation4], %s340_s29 }
  0x56   : > { %538 = dma.done.wait (%p844_p7), %s177_s24, 256  }
  0x57   : > { %540 = vsyncadd (%p844_p7), %s177_s24, 4294967040  ;;  %p845_p4 = scmp.ne.s32.totalorder %s833_s19, 0 }
  0x59   : > { %542 = dma.done.wait (%p845_p4), [#allocation8], 256  }
  0x5a   : > { %544 = vsyncadd (%p845_p4), [#allocation8], 4294967040  ;;  %s204_s23 = scalar_lea.vmem [#allocation9], %s340_s29  ;;  %s349_s10 = sshll.u32 %s563_s0, 8  ;;  %v208_v0 = vld [vmem:[%s180_s4] sm:$0xff]  ;;  %v209_v2 = vld [vmem:[%s180_s4 + $0x8] sm:$0xff] }
  0x5b   : > { %s232_s9 = sshll.u32 %s204_s23, 4  ;;  %v210_v1 = vld [vmem:[#allocation7] sm:$0xff]  ;;  %v211_v4 = vld [vmem:[#allocation7 + $0x8] sm:$0xff]  ;;  %s776_s19 = scalar_lea.hbm %s828_s3, %s349_s10  ;;  %s771_s9 = int_to_ptr.vmem [resolvable:$true] %s232_s9 }
  0x5c   : > { %v212_v3 = vadd.f32 %v210_v1, %v208_v0  ;;  %v213_v5 = vadd.f32 %v211_v4, %v209_v2  ;;  %s217_s8 = scalar_lea.sflag [#allocation6], %s758_s18  ;;  %s485_s0 = scalar_lea.vmem %s771_s9, 256 }
  0x5d   : > { %p486_p13 = scmp.ne.s32.totalorder %s771_s9, %s485_s0  ;;  %s577_s11 = smov [#allocation9]  }
  0x5e   : > { %214 = vst [vmem:[%s204_s23] sm:$0xff] %v212_v3  ;;  %215 = vst [vmem:[%s204_s23 + $0x8] sm:$0xff] %v213_v5  ;;  %s489_s17 = sshll.u32 %s577_s11, 4  ;;  %s490_s17 = int_to_ptr.vmem [resolvable:$false] %s489_s17 }
  0x5f   : > { %p487_p6 = pnand %p486_p13, %p699_p10  ;;  %s491_s5 = scalar_lea.vmem %s490_s17, 512 }
  0x60   : > { %p492_p12 = scmp.lt.s32.totalorder %s771_s9, %s490_s17  ;;  %p493_p11 = scmp.lt.s32.totalorder %s491_s5, %s485_s0 }
  0x61   : > { %p488_p8 = pneg %p487_p6 }
  0x62   : > { %p494_p0 = por %p493_p11, %p492_p12 }
  0x64   : > { %p495_p5 = pnand %p494_p0, %p488_p8 }
  0x66   : > { %498 = shalt.err (!%p495_p5)
}
  0x67   : > { %s499_s25 = scalar_lea.hbm %s776_s19, 256  ;;  %s503_s28 = scalar_lea.hbm %s828_s3, 512 }
  0x68   : > { %p500_p9 = scmp.ne.s32.totalorder %s776_s19, %s499_s25  ;;  %p504_p3 = scmp.lt.u32.totalorder %s776_s19, %s828_s3 }
  0x69   : > { %p505_p7 = scmp.lt.u32.totalorder %s503_s28, %s499_s25  ;;  %p507_p13 = scmp.lt.u32.totalorder %s499_s25, %s776_s19 }
  0x6a   : > { %p501_p1 = pnand %p500_p9, %p699_p10 }
  0x6b   : > { %p506_p4 = por %p505_p7, %p504_p3 }
  0x6c   : > { %p502_p2 = pneg %p501_p1 }
  0x6d   : > { %p508_p6 = por %p507_p13, %p506_p4 }
  0x6f   : > { %p509_p8 = pnand %p508_p6, %p502_p2 }
  0x71   : > { %512 = shalt.err (!%p509_p8)
}
  0x72   : > { %s578_s4 = smov 128   ;;  %s579_s23 = smov 8  }
  0x73   : > { %356 = dma.vmem_to_hbm [thread:$0]  (%p699_p10), %s771_s9, 256, %s776_s19, %s217_s8, %s578_s4, %s578_s4, %s579_s23  }
  0x74 PF: > { %s247_s10 = sand.u32 1, %s551_s12   ;;  %p846_p12 = scmp.ne.s32.totalorder %s836_s22, 0 }
  0x75   : > { %p847_p11 = scmp.ge.s32.totalorder %s571_s16, 2  ;;  %s248_s21 = scalar_lea.sflag [#allocation6], %s247_s10 }
  0x77   : > { %p367_p0 = pnand %p847_p11, %p846_p12 }
  0x79   : > { %546 = dma.done.wait (!%p367_p0), %s248_s21, 256  }
  0x7a   : > { %548 = vsyncadd (!%p367_p0), %s248_s21, 4294967040  ;;  %s21_s16 = sadd.s32 1, %s571_s16   ;;  %s848_s12 = smov %s555_s13 }
  0x7b   : > { %p18_p5 = scmp.ge.s32.totalorder %s21_s16, 4   ;;  %s849_s13 = smov %s559_s14 }
  0x7c   : > { %s850_s14 = smov %s708_s30  ;;  %s851_s0 = smov %s567_s15 }
  0x7d   : > { %s852_s15 = smov %s854_s27  ;;  %20 = sbr.rel (!%p18_p5) target bundleno = 7 (0x7), region = 78 }
  0x84   :  { %253 = vsyncpa [#allocation5], 1 }
  0x85   :  { %255 = vsyncpa [#allocation5 + $0x1], 1 }
  0x86   :  { %256 = vsyncpa [#allocation8], 1 }
  0x87   :  { %257 = vsyncpa [#allocation6], 1 }
  0x88   :  { %259 = vsyncpa [#allocation6 + $0x1], 1 }

</bundles_post_ra>
